<compile_context>
chip_gen: v7x
topology: tpu7x:2x2x1
jax: 0.10.0
libtpu: 0.0.40
codegen_flags: <defaults>
</compile_context>

<pallas_src>
import functools
from typing import NamedTuple

import jax
import jax.numpy as jnp
from jax.experimental import pallas as pl
from jax.experimental.pallas import tpu as pltpu


# ----------------------------------------------------------------------------
# Kernel: one grid step, three MXU matmuls, everything resident in VMEM.
# ----------------------------------------------------------------------------
def ensemble_prior_kernel(x_ref, w1_ref, b12_ref, w2_ref, w3_ref, b3_ref, o_ref):
    # x_ref: (B, input_size) f32.  The PyTorch repeat(E,1,1,1) is implicit:
    # every packed member column sees the same activations.
    b12 = b12_ref[...]                                   # (2, P) f32 biases

    x = x_ref[...].astype(jnp.bfloat16)

    # Layer 1: (B, in) @ (in, 2*E*hid) -- lane-dense, all members + both MLPs.
    h = jnp.dot(x, w1_ref[...], preferred_element_type=jnp.float32) + b12[0:1, :]
    h = jnp.maximum(h, 0.0)                              # ReLU (f32 VPU)

    # Layer 2: (B, P) @ block-diag(P, P) -- one MXU pass, members independent.
    h = jnp.dot(h.astype(jnp.bfloat16), w2_ref[...],
                preferred_element_type=jnp.float32) + b12[1:2, :]
    h = jnp.maximum(h, 0.0)                              # ReLU

    # Layer 3 (head + prior_scale*prior folded into one weight): (B, P) @ (P, Eo).
    o_ref[...] = jnp.dot(h.astype(jnp.bfloat16), w3_ref[...],
                         preferred_element_type=jnp.float32) + b3_ref[...]


# ----------------------------------------------------------------------------
# One-time parameter packing (cold path: call only when parameters change).
# ----------------------------------------------------------------------------
class PackedParams(NamedTuple):
    w1: jax.Array    # (input_size, 2*E*hid)  bf16
    b12: jax.Array   # (2, 2*E*hid)           f32   row0 = b1, row1 = b2
    w2: jax.Array    # (2*E*hid, 2*E*hid)     bf16  block-diagonal
    w3: jax.Array    # (2*E*hid, E*out)       bf16  prior_scale folded in
    b3: jax.Array    # (1, E*out)             f32   prior_scale folded in


def _block_diag(ws):
    """(M, din, dout) per-member weights -> (M*din, M*dout) block-diagonal."""
    M, din, dout = ws.shape
    eye = jnp.eye(M, dtype=ws.dtype)
    return jnp.einsum('mn,mij->minj', eye, ws).reshape(M * din, M * dout)


def pack_params(head_params, prior_params, prior_scale,
                weight_dtype=jnp.bfloat16) -> PackedParams:
    hw1, hb1, hw2, hb2, hw3, hb3 = head_params
    pw1, pb1, pw2, pb2, pw3, pb3 = prior_params
    E, in_size, hid = hw1.shape
    out_size = hw3.shape[2]
    Eh = E * hid
    Eo = E * out_size
    s = jnp.float32(prior_scale)

    # Layer 1: member columns side by side, head block then prior block.
    w1 = jnp.concatenate(
        [jnp.transpose(hw1, (1, 0, 2)).reshape(in_size, Eh),
         jnp.transpose(pw1, (1, 0, 2)).reshape(in_size, Eh)], axis=1)
    b1 = jnp.concatenate([hb1.reshape(1, Eh), pb1.reshape(1, Eh)], axis=1)
    # Layer 2: block-diagonal over all 2*E members (keeps members independent).
    w2 = _block_diag(jnp.concatenate([hw2, pw2], axis=0))
    b2 = jnp.concatenate([hb2.reshape(1, Eh), pb2.reshape(1, Eh)], axis=1)
    b12 = jnp.concatenate([b1, b2], axis=0)              # (2, P)
    # Layer 3: fold the (linear, forward-only) head + prior_scale*prior combine
    # directly into the weights -> a single (P, Eo) matmul in the kernel.
    w3 = jnp.concatenate([_block_diag(hw3), s * _block_diag(pw3)], axis=0)
    b3 = hb3.reshape(1, Eo) + s * pb3.reshape(1, Eo)

    return PackedParams(
        w1=w1.astype(weight_dtype),
        b12=b12.astype(jnp.float32),
        w2=w2.astype(weight_dtype),
        w3=w3.astype(weight_dtype),
        b3=b3.astype(jnp.float32),
    )


# ----------------------------------------------------------------------------
# Hot-path forward: flatten, one grid-less pallas_call, free reshape.
# ----------------------------------------------------------------------------
@functools.partial(jax.jit, static_argnames=("ensemble_size", "output_size"))
def ensemble_with_prior_forward(x, packed: PackedParams, *, ensemble_size,
                                output_size):
    """Returns (q_values, m_values) matching Values(q_values, None)."""
    B = x.shape[0]
    xf = x.reshape(B, -1).astype(jnp.float32)            # Flatten(start_dim=-2)
    in_size = xf.shape[1]
    P = packed.w1.shape[1]                               # 2 * E * hid
    Eo = packed.w3.shape[1]                              # E * out

    flops = 2 * B * (in_size * P + P * P + P * Eo)
    operands = (xf, packed.w1, packed.b12, packed.w2, packed.w3, packed.b3)
    bytes_accessed = sum(int(a.size) * a.dtype.itemsize for a in operands) \
        + B * Eo * 4

    vmem_spec = pl.BlockSpec(memory_space=pltpu.MemorySpace.VMEM)

    # No grid: single invocation, whole arrays resident in VMEM, no pipeline
    # prologue/epilogue or double-buffering overhead.
    # (For large B on v7x, re-introduce a "parallel" batch grid axis instead.)
    out = pl.pallas_call(
        ensemble_prior_kernel,
        out_shape=jax.ShapeDtypeStruct((B, Eo), jnp.float32),
        in_specs=[vmem_spec] * len(operands),
        out_specs=vmem_spec,
        cost_estimate=pl.CostEstimate(
            flops=flops, transcendentals=0, bytes_accessed=bytes_accessed),
    )(*operands)

    # Lane-dense (B, E*out) slab -> (B, E, out); member-major, so this matches
    # the PyTorch swapaxes(0,1) layout with zero data movement.
    q_values = out.reshape(B, ensemble_size, output_size)
    return q_values, None


# ----------------------------------------------------------------------------
# Plain-JAX reference of the PyTorch forward (f32) for verification.
# ----------------------------------------------------------------------------
def ref_forward(x, head_params, prior_params, prior_scale):
    xf = x.reshape(x.shape[0], -1).astype(jnp.float32)

    def mlp(p):
        w1, b1, w2, b2, w3, b3 = p
        h = jnp.einsum('bi,eio->ebo', xf, w1) + b1
        h = jnp.maximum(h, 0.0)
        h = jnp.einsum('ebi,eio->ebo', h, w2) + b2
        h = jnp.maximum(h, 0.0)
        return jnp.einsum('ebi,eio->ebo', h, w3) + b3

    q = mlp(head_params) + prior_scale * mlp(prior_params)
    return jnp.swapaxes(q, 0, 1)


if __name__ == "__main__":
    key = jax.random.PRNGKey(0)

    # Small shapes consistent with the module (DeepSea one-hot board -> flatten).
    B, rows, cols = 2, 4, 4            # x: (2, 4, 4) -> input_size = 16
    ensemble_size = 4
    hidden_size = 32
    output_size = 4
    prior_scale = 3.0
    input_size = rows * cols

    keys = jax.random.split(key, 7)
    x = jax.random.normal(keys[0], (B, rows, cols), dtype=jnp.float32)

    def make_params(ks):
        # EnsembleLinear layout: weight (E, d_in, d_out), bias (E, 1, d_out).
        w1 = 0.1 * jax.random.normal(ks[0], (ensemble_size, input_size, hidden_size), jnp.float32)
        b1 = jnp.full((ensemble_size, 1, hidden_size), 0.01, jnp.float32)
        w2 = 0.1 * jax.random.normal(ks[1], (ensemble_size, hidden_size, hidden_size), jnp.float32)
        b2 = jnp.full((ensemble_size, 1, hidden_size), 0.01, jnp.float32)
        w3 = 0.1 * jax.random.normal(ks[2], (ensemble_size, hidden_size, output_size), jnp.float32)
        b3 = jnp.full((ensemble_size, 1, output_size), 0.01, jnp.float32)
        return (w1, b1, w2, b2, w3, b3)

    head_params = make_params(keys[1:4])
    prior_params = make_params(keys[4:7])

    # Cold path: pack once (only re-run when parameters change).
    packed = jax.tree_util.tree_map(jax.block_until_ready,
                                    pack_params(head_params, prior_params, prior_scale))

    # Hot path: single pallas_call.
    q_values, m_values = ensemble_with_prior_forward(
        x, packed, ensemble_size=ensemble_size, output_size=output_size)
    q_values = jax.block_until_ready(q_values)

    assert q_values.shape == (B, ensemble_size, output_size)
    assert m_values is None
    ref = ref_forward(x, head_params, prior_params, prior_scale)
    # bf16 weights/activations in the kernel -> loosened tolerance vs f32 ref.
    assert jnp.allclose(q_values, ref, atol=5e-2, rtol=5e-2), (
        "mismatch vs reference; max abs diff = %f"
        % float(jnp.max(jnp.abs(q_values - ref))))

    print("KERNEL_OK")
</pallas_src>

<mosaic_0001>
module attributes {stable_mosaic.version = 11 : i64} {
  func.func @ensemble_prior_kernel(%arg0: memref<2x16xf32, #tpu.memory_space<vmem>>, %arg1: memref<16x256xbf16, #tpu.memory_space<vmem>>, %arg2: memref<2x256xf32, #tpu.memory_space<vmem>>, %arg3: memref<256x256xbf16, #tpu.memory_space<vmem>>, %arg4: memref<256x16xbf16, #tpu.memory_space<vmem>>, %arg5: memref<1x16xf32, #tpu.memory_space<vmem>>, %arg6: memref<2x16xf32, #tpu.memory_space<vmem>>) attributes {dimension_semantics = [], scalar_prefetch = 0 : i64, scratch_operands = 0 : i64, tpu.core_type = #tpu.core_type<tc>} {
    %c0 = arith.constant 0 : index
    %c0_0 = arith.constant 0 : index
    %0 = vector.load %arg2[%c0, %c0_0] : memref<2x256xf32, #tpu.memory_space<vmem>>, vector<2x256xf32>
    %c0_1 = arith.constant 0 : index
    %c0_2 = arith.constant 0 : index
    %1 = vector.load %arg0[%c0_1, %c0_2] : memref<2x16xf32, #tpu.memory_space<vmem>>, vector<2x16xf32>
    %2 = arith.truncf %1 : vector<2x16xf32> to vector<2x16xbf16>
    %c0_3 = arith.constant 0 : index
    %c0_4 = arith.constant 0 : index
    %3 = vector.load %arg1[%c0_3, %c0_4] : memref<16x256xbf16, #tpu.memory_space<vmem>>, vector<16x256xbf16>
    %cst = arith.constant dense<0.000000e+00> : vector<2x256xf32>
    %4 = tpu.matmul %2, %3, %cst {dimension_numbers = #tpu.dot_dimension_numbers<[1], [0], [0], [1], [0, 0, 1, 1], [], []>} : vector<2x16xbf16>, vector<16x256xbf16>, vector<2x256xf32> -> vector<2x256xf32>
    %5 = vector.extract_strided_slice %0 {offsets = [0, 0], sizes = [1, 256], strides = [1, 1]} : vector<2x256xf32> to vector<1x256xf32>
    %6 = vector.broadcast %5 : vector<1x256xf32> to vector<2x256xf32>
    %7 = arith.addf %4, %6 : vector<2x256xf32>
    %cst_5 = arith.constant 0.000000e+00 : f32
    %8 = vector.broadcast %cst_5 : f32 to vector<2x256xf32>
    %9 = arith.maximumf %7, %8 : vector<2x256xf32>
    %10 = arith.truncf %9 : vector<2x256xf32> to vector<2x256xbf16>
    %c0_6 = arith.constant 0 : index
    %c0_7 = arith.constant 0 : index
    %11 = vector.load %arg3[%c0_6, %c0_7] : memref<256x256xbf16, #tpu.memory_space<vmem>>, vector<256x256xbf16>
    %cst_8 = arith.constant dense<0.000000e+00> : vector<2x256xf32>
    %12 = tpu.matmul %10, %11, %cst_8 {dimension_numbers = #tpu.dot_dimension_numbers<[1], [0], [0], [1], [0, 0, 1, 1], [], []>} : vector<2x256xbf16>, vector<256x256xbf16>, vector<2x256xf32> -> vector<2x256xf32>
    %13 = vector.extract_strided_slice %0 {offsets = [1, 0], sizes = [1, 256], strides = [1, 1]} : vector<2x256xf32> to vector<1x256xf32>
    %14 = vector.broadcast %13 : vector<1x256xf32> to vector<2x256xf32>
    %15 = arith.addf %12, %14 : vector<2x256xf32>
    %cst_9 = arith.constant 0.000000e+00 : f32
    %16 = vector.broadcast %cst_9 : f32 to vector<2x256xf32>
    %17 = arith.maximumf %15, %16 : vector<2x256xf32>
    %18 = arith.truncf %17 : vector<2x256xf32> to vector<2x256xbf16>
    %c0_10 = arith.constant 0 : index
    %c0_11 = arith.constant 0 : index
    %19 = vector.load %arg4[%c0_10, %c0_11] : memref<256x16xbf16, #tpu.memory_space<vmem>>, vector<256x16xbf16>
    %cst_12 = arith.constant dense<0.000000e+00> : vector<2x16xf32>
    %20 = tpu.matmul %18, %19, %cst_12 {dimension_numbers = #tpu.dot_dimension_numbers<[1], [0], [0], [1], [0, 0, 1, 1], [], []>} : vector<2x256xbf16>, vector<256x16xbf16>, vector<2x16xf32> -> vector<2x16xf32>
    %c0_13 = arith.constant 0 : index
    %c0_14 = arith.constant 0 : index
    %21 = vector.load %arg5[%c0_13, %c0_14] : memref<1x16xf32, #tpu.memory_space<vmem>>, vector<1x16xf32>
    %22 = vector.broadcast %21 : vector<1x16xf32> to vector<2x16xf32>
    %23 = arith.addf %20, %22 : vector<2x16xf32>
    %c0_15 = arith.constant 0 : index
    %c0_16 = arith.constant 0 : index
    %24 = vector.load %arg6[%c0_15, %c0_16] : memref<2x16xf32, #tpu.memory_space<vmem>>, vector<2x16xf32>
    tpu.vector_store %arg6[%c0_15, %c0_16], %23 {strides = array<i32>} : memref<2x16xf32, #tpu.memory_space<vmem>>, vector<2x16xf32>,
    return
  }
}

</mosaic_0001>

<bundles_post_ra>
// kernel: ensemble_with_prior_forward.1
= control target key start
LH: loop header
LB: loop body
LE: loop exit
PB: predicated region body
PF: predicated region fallthrough
CT: control target
= control target key end

     0   :  { %11 = vsyncpa [#allocation3], 0  ;;  %s727_s21 = smov [#allocation2]   ;;  %s844_s0 = inlined_call_operand.vmem [shape: f32[2,16], index: 0, kind: input, shape index: {}]   ;;  %s845_s1 = inlined_call_operand.vmem [shape: bf16[16,256], index: 1, kind: input, shape index: {}]   ;;  %s846_s2 = inlined_call_operand.vmem [shape: f32[2,256], index: 2, kind: input, shape index: {}]   ;;  %s847_s3 = inlined_call_operand.hbm [shape: bf16[256,256], index: 3, kind: input, shape index: {}]   ;;  %s848_s4 = inlined_call_operand.vmem [shape: bf16[256,16], index: 4, kind: input, shape index: {}]   ;;  %s849_s5 = inlined_call_operand.vmem [shape: f32[1,16], index: 5, kind: input, shape index: {}]   ;;  %s850_s6 = inlined_call_operand.vmem [shape: f32[2,16], index: 6, kind: output, shape index: {}]  }
   0x1   :  { %s23_s22 = sshll.u32 %s727_s21, 4  ;;  %s703_s25 = scalar_lea.hbm %s847_s3, 4096  ;;  %s24_s22 = int_to_ptr.vmem [resolvable:$true] %s23_s22 }
   0x2   :  { %p704_p0 = scmp.ne.s32.totalorder %s847_s3, %s703_s25  ;;  %p707_p1 = scmp.lt.u32.totalorder %s703_s25, %s847_s3 }
   0x4   :  { %p709_p2 = pnand %p707_p1, %p704_p0 }
   0x6   :  { %712 = shalt.err (!%p709_p2)
}
   0x7   :  { %s713_s30 = scalar_lea.vmem %s24_s22, 4096  ;;  %p718_p4 = scmp.lt.s32.totalorder %s24_s22, %s24_s22 }
   0x8   :  { %p714_p3 = scmp.ne.s32.totalorder %s24_s22, %s713_s30  ;;  %p719_p5 = scmp.lt.s32.totalorder %s713_s30, %s713_s30 }
   0xa   :  { %p720_p6 = por %p719_p5, %p718_p4 }
   0xc   :  { %p721_p7 = pnand %p720_p6, %p714_p3 }
   0xe   :  { %724 = shalt.err (!%p721_p7)
}
   0xf   :  { %s728_s7 = smov 128   ;;  %s729_s8 = smov 8  }
  0x10   :  { %29 = dma.hbm_to_vmem [thread:$0]  %s847_s3, 4096, %s24_s22, [#allocation3], %s728_s7, %s728_s7, %s729_s8  }
  0x11   :  { %725 = dma.done.wait [#allocation3], 4096  }
  0x12   :  { %726 = vsyncadd [#allocation3], 4294963200  ;;  %v730_v0 = vmov 0   ;;  %v636_v1 = vld [vmem:[%s845_s1 + $0x4] ss:$8 sps:$4 sm:$0xff]   ;;  %vm72_vm0 = vcmask 130048   ;;  %v44_v49 = vlaneseq }
  0x13   :  { %108 = vmatprep.mubr.bf16.mxu0 %v730_v0  ;;  %v638_v2 = vld [vmem:[%s845_s1] ss:$8 sps:$4 sm:$0xff]   ;;  %76 = vmatprep.subr.bf16.mxu0 %v636_v1  ;;  %v639_v5 = vld [vmem:[#allocation2 + $0x4] ss:$8 sps:$4 sm:$0xff]   ;;  %v642_v7 = vld [vmem:[#allocation2 + $0x14] ss:$8 sps:$4 sm:$0xff]  }
  0x14   :  { %v39_v3 = vld [vmem:[%s844_s0] sm:$0x3]  ;;  %77 = vmatpush1.bf16.msra.mxu0 %v638_v2  ;;  %331 = vmatprep.subr.bf16.mxu1 %v639_v5  ;;  %v644_v8 = vld [vmem:[#allocation2 + $0x10] ss:$8 sps:$4 sm:$0xff]   ;;  %v645_v9 = vld [vmem:[#allocation2 + $0x24] ss:$8 sps:$4 sm:$0xff]  }
  0x15   :  { %v40_v4 = vpack.c.bf16 %v39_v3, %v39_v3  ;;  %v641_v6 = vld [vmem:[#allocation2] ss:$8 sps:$4 sm:$0xff]   ;;  %v648_v11 = vld [vmem:[#allocation2 + $0x34] ss:$8 sps:$4 sm:$0xff]   ;;  %v650_v12 = vld [vmem:[#allocation2 + $0x30] ss:$8 sps:$4 sm:$0xff]  }
  0x16   :  { %332 = vmatpush1.bf16.msra.mxu1 %v641_v6  ;;  %v647_v10 = vld [vmem:[#allocation2 + $0x20] ss:$8 sps:$4 sm:$0xff]   ;;  %v651_v13 = vld [vmem:[#allocation2 + $0x44] ss:$8 sps:$4 sm:$0xff]   ;;  %v654_v15 = vld [vmem:[#allocation2 + $0x54] ss:$8 sps:$4 sm:$0xff]  }
  0x17   :  { %560 = vmatmul.mubr.msk.bf16.vlgmr.msra.gmra.mrb[0].mxu0 %vm72_vm0, %v40_v4  ;;  %333 = vmatprep.subr.bf16.mxu1 %v642_v7  ;;  %v653_v14 = vld [vmem:[#allocation2 + $0x40] ss:$8 sps:$4 sm:$0xff]   ;;  %v656_v16 = vld [vmem:[#allocation2 + $0x50] ss:$8 sps:$4 sm:$0xff]   ;;  %v657_v17 = vld [vmem:[#allocation2 + $0x64] ss:$8 sps:$4 sm:$0xff]  }
  0x18   :  { %v659_v18 = vld [vmem:[#allocation2 + $0x60] ss:$8 sps:$4 sm:$0xff]   ;;  %v660_v19 = vld [vmem:[#allocation2 + $0x74] ss:$8 sps:$4 sm:$0xff]   ;;  %v662_v20 = vld [vmem:[#allocation2 + $0x70] ss:$8 sps:$4 sm:$0xff]  }
  0x19   :  { %v663_v21 = vld [vmem:[#allocation2 + $0x84] ss:$8 sps:$4 sm:$0xff]   ;;  %v665_v22 = vld [vmem:[#allocation2 + $0x80] ss:$8 sps:$4 sm:$0xff]   ;;  %v666_v23 = vld [vmem:[#allocation2 + $0x94] ss:$8 sps:$4 sm:$0xff]  }
  0x1a   :  { %334 = vmatpush1.bf16.msra.mxu1 %v644_v8  ;;  %v668_v24 = vld [vmem:[#allocation2 + $0x90] ss:$8 sps:$4 sm:$0xff]   ;;  %v669_v25 = vld [vmem:[#allocation2 + $0xa4] ss:$8 sps:$4 sm:$0xff]   ;;  %v671_v26 = vld [vmem:[#allocation2 + $0xa0] ss:$8 sps:$4 sm:$0xff]  }
  0x1b   :  { %335 = vmatprep.subr.bf16.mxu1 %v645_v9  ;;  %v672_v27 = vld [vmem:[#allocation2 + $0xb4] ss:$8 sps:$4 sm:$0xff]   ;;  %v674_v28 = vld [vmem:[#allocation2 + $0xb0] ss:$8 sps:$4 sm:$0xff]   ;;  %v675_v29 = vld [vmem:[#allocation2 + $0xc4] ss:$8 sps:$4 sm:$0xff]  }
  0x1c   :  { %v677_v30 = vld [vmem:[#allocation2 + $0xc0] ss:$8 sps:$4 sm:$0xff]   ;;  %v678_v31 = vld [vmem:[#allocation2 + $0xd4] ss:$8 sps:$4 sm:$0xff]   ;;  %v680_v32 = vld [vmem:[#allocation2 + $0xd0] ss:$8 sps:$4 sm:$0xff]  }
  0x1d   :  { %v681_v33 = vld [vmem:[#allocation2 + $0xe4] ss:$8 sps:$4 sm:$0xff]   ;;  %v683_v34 = vld [vmem:[#allocation2 + $0xe0] ss:$8 sps:$4 sm:$0xff]   ;;  %v684_v35 = vld [vmem:[#allocation2 + $0xf4] ss:$8 sps:$4 sm:$0xff]  }
  0x1e   :  { %336 = vmatpush1.bf16.msra.mxu1 %v647_v10  ;;  %v686_v36 = vld [vmem:[#allocation2 + $0xf0] ss:$8 sps:$4 sm:$0xff]   ;;  %v687_v37 = vld [vmem:[%s848_s4 + $0x40] sm:$0xff]   ;;  %v693_v43 = vld [vmem:[%s848_s4 + $0x58] sm:$0xff]   ;;  %v45_v50 = vshrl.u32 %v44_v49, 7  ;;  %vm551_vm1 = vcmask 123904  }
  0x1f   :  { %337 = vmatprep.subr.bf16.mxu1 %v648_v11  ;;  %v688_v38 = vld [vmem:[%s848_s4] sm:$0xff]   ;;  %v689_v39 = vld [vmem:[%s848_s4 + $0x48] sm:$0xff]   ;;  %610 = vmatprep.subr.bf16.mxu0 %v687_v37  ;;  %v691_v41 = vld [vmem:[%s848_s4 + $0x50] sm:$0xff]  }
  0x20   :  { %611 = vmatpush3.bf16.msra.mxu0 %v688_v38  ;;  %v690_v40 = vld [vmem:[%s848_s4 + $0x8] sm:$0xff]   ;;  %v692_v42 = vld [vmem:[%s848_s4 + $0x10] sm:$0xff]   ;;  %v694_v44 = vld [vmem:[%s848_s4 + $0x18] sm:$0xff]   ;;  %v46_v51 = vsub.s32 0, %v45_v50  ;;  %v50_v53 = vsub.s32 2, %v45_v50  ;;  %v155_v8 = vsub.s32 1, %v45_v50 }
  0x21   :  { %612 = vmatprep.subr.bf16.mxu0 %v689_v39  ;;  %v695_v45 = vld [vmem:[%s848_s4 + $0x60] sm:$0xff]   ;;  %v697_v47 = vld [vmem:[%s848_s4 + $0x68] sm:$0xff]   ;;  %v699_v4 = vld [vmem:[%s848_s4 + $0x70] sm:$0xff]   ;;  %v159_v9 = vsub.s32 3, %v45_v50 }
  0x22   :  { %338 = vmatpush1.bf16.msra.mxu1 %v650_v12  ;;  %v696_v46 = vld [vmem:[%s848_s4 + $0x20] sm:$0xff]   ;;  %v698_v48 = vld [vmem:[%s848_s4 + $0x28] sm:$0xff]   ;;  %v700_v5 = vld [vmem:[%s848_s4 + $0x30] sm:$0xff]  }
  0x23   :  { %339 = vmatprep.subr.bf16.mxu1 %v651_v13  ;;  %v38_v52 = vld [vmem:[%s846_s2] sm:$0xf]  ;;  %v701_v6 = vld [vmem:[%s848_s4 + $0x78] sm:$0xff]  }
  0x24   :  { %613 = vmatpush3.bf16.msra.mxu0 %v690_v40  ;;  %v47_v54 = vrot.slane %v38_v52, %v46_v51  ;;  %v51_v55 = vrot.slane %v38_v52, %v50_v53  ;;  %v702_v7 = vld [vmem:[%s848_s4 + $0x38] sm:$0xff]   ;;  %v156_v10 = vrot.slane %v38_v52, %v155_v8  ;;  %v160_v11 = vrot.slane %v38_v52, %v159_v9 }
  0x25   :  { %614 = vmatprep.subr.bf16.mxu0 %v691_v41 }
  0x26   :  { %340 = vmatpush1.bf16.msra.mxu1 %v653_v14  ;;  %v57_v56 = vrot.slane %v47_v54, %v46_v51  ;;  %v61_v57 = vrot.slane %v51_v55, %v46_v51  ;;  %v166_v12 = vrot.slane %v156_v10, %v155_v8  ;;  %v170_v13 = vrot.slane %v160_v11, %v155_v8 }
  0x27   :  { %341 = vmatprep.subr.bf16.mxu1 %v654_v15 }
  0x28   :  { %615 = vmatpush3.bf16.msra.mxu0 %v692_v42 }
  0x29   :  { %616 = vmatprep.subr.bf16.mxu0 %v693_v43 }
  0x2a   :  { %342 = vmatpush1.bf16.msra.mxu1 %v656_v16 }
  0x2b   :  { %343 = vmatprep.subr.bf16.mxu1 %v657_v17 }
  0x2c   :  { %617 = vmatpush3.bf16.msra.mxu0 %v694_v44 }
  0x2d   :  { %618 = vmatprep.subr.bf16.mxu0 %v695_v45 }
  0x2e   :  { %344 = vmatpush1.bf16.msra.mxu1 %v659_v18 }
  0x2f   :  { %345 = vmatprep.subr.bf16.mxu1 %v660_v19 }
  0x30   :  { %619 = vmatpush3.bf16.msra.mxu0 %v696_v46 }
  0x31   :  { %620 = vmatprep.subr.bf16.mxu0 %v697_v47 }
  0x32   :  { %346 = vmatpush1.bf16.msra.mxu1 %v662_v20 }
  0x33   :  { %347 = vmatprep.subr.bf16.mxu1 %v663_v21 }
  0x34   :  { %621 = vmatpush3.bf16.msra.mxu0 %v698_v48 }
  0x35   :  { %622 = vmatprep.subr.bf16.mxu0 %v699_v4 }
  0x36   :  { %348 = vmatpush1.bf16.msra.mxu1 %v665_v22 }
  0x37   :  { %349 = vmatprep.subr.bf16.mxu1 %v666_v23 }
  0x38   :  { %623 = vmatpush3.bf16.msra.mxu0 %v700_v5 }
  0x39   :  { %624 = vmatprep.subr.bf16.mxu0 %v701_v6 }
  0x3a   :  { %350 = vmatpush1.bf16.msra.mxu1 %v668_v24 }
  0x3b   :  { %351 = vmatprep.subr.bf16.mxu1 %v669_v25  ;;  %v593_v25 = vld [vmem:[%s849_s5] ss:$0 sm:$0xff] }
  0x3c   :  { %625 = vmatpush3.bf16.msra.mxu0 %v702_v7 }
  0x3e   :  { %352 = vmatpush1.bf16.msra.mxu1 %v671_v26 }
  0x3f   :  { %353 = vmatprep.subr.bf16.mxu1 %v672_v27 }
  0x42   :  { %354 = vmatpush1.bf16.msra.mxu1 %v674_v28 }
  0x43   :  { %355 = vmatprep.subr.bf16.mxu1 %v675_v29 }
  0x46   :  { %356 = vmatpush1.bf16.msra.mxu1 %v677_v30 }
  0x47   :  { %357 = vmatprep.subr.bf16.mxu1 %v678_v31 }
  0x4a   :  { %358 = vmatpush1.bf16.msra.mxu1 %v680_v32 }
  0x4b   :  { %359 = vmatprep.subr.bf16.mxu1 %v681_v33 }
  0x4e   :  { %360 = vmatpush1.bf16.msra.mxu1 %v683_v34 }
  0x4f   :  { %361 = vmatprep.subr.bf16.mxu1 %v684_v35 }
  0x52   :  { %362 = vmatpush1.bf16.msra.mxu1 %v686_v36 }
  0xea   :  { %v110_v58 = vpop.f32.mrb[0].mxu0 }
  0xeb   :  { %v111_v59 = vadd.f32 %v110_v58, %v57_v56  ;;  %v112_v60 = vpop.f32.mrb[1].mxu0 }
  0xec   :  { %v113_v61 = vadd.f32 %v112_v60, %v61_v57  ;;  %v114_v62 = vpop.f32.mrb[2].mxu0 }
  0xed   :  { %v117_v63 = vmax.f32 %v111_v59, 0.0  ;;  %v115_v0 = vpop.f32.mrb[3].mxu0 }
  0xee   :  { %v118_v1 = vmax.f32 %v113_v61, 0.0 }
  0xef   :  { %v119_v3 = vpack.c.bf16 %v117_v63, %v117_v63 }
  0xf0   :  { %v120_v2 = vpack.c.bf16 %v118_v1, %v118_v1 }
  0xf2   :  { %363 = vmatprep.mubr.bf16.mxu1 %v120_v2 }
  0xf3   :  { %364 = vmatmul.mubr.bf16.vlgmr.msra.gmra.mrb[0].mxu1 %v119_v3 }
 0x1c6   :  { %v365_v14 = vpop.f32.mrb[0].mxu1 }
 0x1c7   :  { %v366_v15 = vadd.f32 %v365_v14, %v166_v12  ;;  %v367_v16 = vpop.f32.mrb[1].mxu1 }
 0x1c8   :  { %v368_v17 = vadd.f32 %v367_v16, %v170_v13  ;;  %v369_v18 = vpop.f32.mrb[2].mxu1 }
 0x1c9   :  { %v372_v19 = vmax.f32 %v366_v15, 0.0  ;;  %v370_v20 = vpop.f32.mrb[3].mxu1 }
 0x1ca   :  { %v373_v21 = vmax.f32 %v368_v17, 0.0 }
 0x1cb   :  { %v374_v23 = vpack.c.bf16 %v372_v19, %v372_v19 }
 0x1cc   :  { %v375_v22 = vpack.c.bf16 %v373_v21, %v373_v21 }
 0x1ce   :  { %543 = vmatprep.mubr.bf16.mxu0 %v375_v22 }
 0x1cf   :  { %544 = vmatmul.mubr.bf16.vlgmr.msra.gmra.mrb[4].mxu0 %v374_v23 }
 0x2a2   :  { %v626_v24 = vpop.f32.mrb[4].mxu0 }
 0x2a3   :  { %v627_v26 = vpop.f32.mrb[5].mxu0 }
 0x2a4   :  { %v628_v27 = vadd.f32 %v627_v26, %v626_v24  ;;  %v629_v28 = vpop.f32.mrb[6].mxu0 }
 0x2a5   :  { %v630_v29 = vpop.f32.mrb[7].mxu0 }
 0x2a6   :  { %v546_v30 = vadd.f32 %v628_v27, %v593_v25 }
 0x2a8   :  { %552 = vst.msk [vmem:[%s850_s6] sm:$0x3] %vm551_vm1, %v546_v30 }
 0x2a9   :  { %557 = vsyncpa [#allocation3], 1 }

</bundles_post_ra>
